<compile_context>
chip_gen: v7x
topology: tpu7x:2x2x1
jax: 0.10.0
libtpu: 0.0.40
codegen_flags: <defaults>
</compile_context>

<pallas_src>
import functools

import numpy as np
import jax
import jax.numpy as jnp
from jax.experimental import pallas as pl
from jax.experimental.pallas import tpu as pltpu

NEG_INF = -1e10  # matches torch masked_fill value -10000000000.0


# ----------------------------------------------------------------------------
# Fused MHA kernel.  Grid = (batch, head); head is an "arbitrary" reduction
# axis accumulating fc contributions; batch is "parallel".
# ----------------------------------------------------------------------------
def _fused_mha_kernel(q_ref, k_ref, v_ref, m_ref,
                      wq_ref, wk_ref, wv_ref, fcw_ref,
                      fcb_ref, lnw_ref, lnb_ref,
                      out_ref, attn_ref,
                      acc_ref, *, eps):
    h = pl.program_id(1)
    n_head = pl.num_programs(1)

    x_q = q_ref[0]                            # (l_q, d_model) f32 (residual)
    x_qb = x_q.astype(jnp.bfloat16)           # bf16 MXU operand
    x_k = k_ref[0]                            # (l_k, d_model) bf16
    x_v = v_ref[0]                            # (l_v, d_model) bf16

    # --- this head's projections (bf16 operands, f32 accumulation) ----------
    # 1/temperature is folded into wq in the wrapper -> no in-kernel scale.
    qh = jnp.dot(x_qb, wq_ref[0], preferred_element_type=jnp.float32)  # (l_q, d_k)
    kh = jnp.dot(x_k, wk_ref[0], preferred_element_type=jnp.float32)   # (l_k, d_k)
    vh = jnp.dot(x_v, wv_ref[0], preferred_element_type=jnp.float32)   # (l_v, d_v)

    # --- scores: contract last dims of q and k (no physical K transpose) ----
    s = jax.lax.dot_general(qh.astype(jnp.bfloat16), kh.astype(jnp.bfloat16),
                            (((1,), (1,)), ((), ())),
                            preferred_element_type=jnp.float32)        # (l_q, l_k)

    # masked_fill semantics (exactly matches the reference, including the
    # degenerate all-masked row -> uniform softmax case).
    mf = m_ref[0].astype(jnp.float32)                                  # (l_q, l_k) 0/1
    s = jnp.where(mf != 0.0, jnp.float32(NEG_INF), s)

    # --- numerically-stable softmax (f32 elementwise; exp -> EUP) -----------
    s = s - jnp.max(s, axis=-1, keepdims=True)
    e = jnp.exp(s)
    p = e * pl.reciprocal(jnp.sum(e, axis=-1, keepdims=True), approx=True)
    attn_ref[0, 0] = p.astype(attn_ref.dtype)        # attn dropout == identity

    # --- head output and its fc contribution (accumulated over heads) -------
    o_h = jnp.dot(p.astype(jnp.bfloat16), vh.astype(jnp.bfloat16),
                  preferred_element_type=jnp.float32)                  # (l_q, d_v)
    contrib = jnp.dot(o_h.astype(jnp.bfloat16), fcw_ref[0],
                      preferred_element_type=jnp.float32)              # (l_q, d_model)

    @pl.when(h == 0)
    def _():
        acc_ref[...] = contrib

    @pl.when(h != 0)
    def _():
        acc_ref[...] = acc_ref[...] + contrib

    # --- fc bias + residual + LayerNorm, once per batch item ----------------
    @pl.when(h == n_head - 1)
    def _():
        y = acc_ref[...] + fcb_ref[...] + x_q          # fc dropout == identity
        mu = jnp.mean(y, axis=-1, keepdims=True)
        var = jnp.mean((y - mu) ** 2, axis=-1, keepdims=True)
        yn = (y - mu) * jax.lax.rsqrt(var + eps)
        out_ref[0] = (yn * lnw_ref[...] + lnb_ref[...]).astype(out_ref.dtype)


# ----------------------------------------------------------------------------
# MultiHeadAttention forward (single pallas_call)
# ----------------------------------------------------------------------------
def multi_head_attention(params, q, k, v, mask):
    n_head, d_k, d_v = params["n_head"], params["d_k"], params["d_v"]
    sz_b, len_q, d_model = q.shape
    len_k = k.shape[1]
    len_v = v.shape[1]

    temperature = float(np.power(d_k, 0.5))

    # Head-major, pre-transposed, bf16 weights; 1/temperature folded into wq.
    wq_h = ((params["w_qs"] / temperature).T
            .reshape(d_model, n_head, d_k).transpose(1, 0, 2)
            .astype(jnp.bfloat16))                                   # (H, d_model, d_k)
    wk_h = (params["w_ks"].T.reshape(d_model, n_head, d_k)
            .transpose(1, 0, 2).astype(jnp.bfloat16))                # (H, d_model, d_k)
    wv_h = (params["w_vs"].T.reshape(d_model, n_head, d_v)
            .transpose(1, 0, 2).astype(jnp.bfloat16))                # (H, d_model, d_v)
    fcw_h = params["fc_w"].T.reshape(n_head, d_v, d_model).astype(jnp.bfloat16)
    fcb = params["fc_b"].reshape(1, d_model).astype(jnp.float32)
    lnw = params["ln_w"].reshape(1, d_model).astype(jnp.float32)
    lnb = params["ln_b"].reshape(1, d_model).astype(jnp.float32)

    # bf16 activations for the MXU; q stays f32 (residual / LN precision).
    k_b = k.astype(jnp.bfloat16)
    v_b = v.astype(jnp.bfloat16)
    # bf16 {0,1} mask: half the bytes of an f32 bias; its block index is
    # constant across the head axis so it is DMA'd once per batch item.
    mask_b = mask.astype(jnp.bfloat16)

    kern = functools.partial(_fused_mha_kernel, eps=1e-5)

    # Explicit scoped-VMEM limit: per-step working set (double-buffered blocks
    # + scratch) with headroom, capped below the v7x physical budget.
    def nbytes(shape, dtype):
        return int(np.prod(shape)) * jnp.dtype(dtype).itemsize

    per_step = (
        nbytes((1, len_q, d_model), jnp.float32)          # q block
        + nbytes((1, len_k, d_model), jnp.bfloat16)       # k block
        + nbytes((1, len_v, d_model), jnp.bfloat16)       # v block
        + nbytes((1, len_q, len_k), jnp.bfloat16)         # mask block
        + 2 * nbytes((1, d_model, d_k), jnp.bfloat16)     # wq, wk blocks
        + nbytes((1, d_model, d_v), jnp.bfloat16)         # wv block
        + nbytes((1, d_v, d_model), jnp.bfloat16)         # fcw block
        + 3 * nbytes((1, d_model), jnp.float32)           # fcb, lnw, lnb
        + nbytes((1, len_q, d_model), jnp.float32)        # out block
        + nbytes((1, 1, len_q, len_k), jnp.bfloat16)      # attn block
    )
    working_set = 2 * per_step + nbytes((len_q, d_model), jnp.float32)
    vmem_limit = int(min(max(2 * working_set + (4 << 20), 8 << 20), 48 << 20))

    out, attn = pl.pallas_call(
        kern,
        out_shape=(
            jax.ShapeDtypeStruct((sz_b, len_q, d_model), jnp.float32),
            jax.ShapeDtypeStruct((n_head, sz_b, len_q, len_k), jnp.bfloat16),
        ),
        grid_spec=pltpu.PrefetchScalarGridSpec(
            num_scalar_prefetch=0,
            grid=(sz_b, n_head),
            in_specs=[
                pl.BlockSpec((1, len_q, d_model), lambda b, h: (b, 0, 0)),  # q (f32)
                pl.BlockSpec((1, len_k, d_model), lambda b, h: (b, 0, 0)),  # k (bf16)
                pl.BlockSpec((1, len_v, d_model), lambda b, h: (b, 0, 0)),  # v (bf16)
                pl.BlockSpec((1, len_q, len_k), lambda b, h: (b, 0, 0)),    # mask
                pl.BlockSpec((1, d_model, d_k), lambda b, h: (h, 0, 0)),    # wq_h
                pl.BlockSpec((1, d_model, d_k), lambda b, h: (h, 0, 0)),    # wk_h
                pl.BlockSpec((1, d_model, d_v), lambda b, h: (h, 0, 0)),    # wv_h
                pl.BlockSpec((1, d_v, d_model), lambda b, h: (h, 0, 0)),    # fcw_h
                pl.BlockSpec((1, d_model), lambda b, h: (0, 0)),            # fc_b
                pl.BlockSpec((1, d_model), lambda b, h: (0, 0)),            # ln_w
                pl.BlockSpec((1, d_model), lambda b, h: (0, 0)),            # ln_b
            ],
            out_specs=[
                pl.BlockSpec((1, len_q, d_model), lambda b, h: (b, 0, 0)),
                pl.BlockSpec((1, 1, len_q, len_k), lambda b, h: (h, b, 0, 0)),
            ],
            scratch_shapes=[pltpu.VMEM((len_q, d_model), jnp.float32)],
        ),
        compiler_params=pltpu.CompilerParams(
            dimension_semantics=("parallel", "arbitrary"),
            vmem_limit_bytes=vmem_limit,
        ),
    )(q, k_b, v_b, mask_b, wq_h, wk_h, wv_h, fcw_h, fcb, lnw, lnb)

    # (n_head, sz_b, l_q, l_k) -> (n_head*sz_b, l_q, l_k): contiguous reshape,
    # matches the PyTorch head-major batching of ScaledDotProductAttention.
    attn = attn.reshape(n_head * sz_b, len_q, len_k)
    return out, attn


# ----------------------------------------------------------------------------
# Pure-JAX f32 reference (for correctness check)
# ----------------------------------------------------------------------------
def reference_mha(params, q, k, v, mask):
    n_head, d_k, d_v = params["n_head"], params["d_k"], params["d_v"]
    sz_b, len_q, d_model = q.shape
    len_k = k.shape[1]
    residual = q
    qp = (q.reshape(-1, d_model) @ params["w_qs"].T).reshape(sz_b, len_q, n_head, d_k)
    kp = (k.reshape(-1, d_model) @ params["w_ks"].T).reshape(sz_b, len_k, n_head, d_k)
    vp = (v.reshape(-1, d_model) @ params["w_vs"].T).reshape(sz_b, len_k, n_head, d_v)
    qh = jnp.transpose(qp, (2, 0, 1, 3)).reshape(-1, len_q, d_k)
    kh = jnp.transpose(kp, (2, 0, 1, 3)).reshape(-1, len_k, d_k)
    vh = jnp.transpose(vp, (2, 0, 1, 3)).reshape(-1, len_k, d_v)
    mask_rep = jnp.tile(mask, (n_head, 1, 1))
    s = jnp.einsum("bqd,bkd->bqk", qh, kh) / float(np.power(d_k, 0.5))
    s = jnp.where(mask_rep, NEG_INF, s)
    p = jax.nn.softmax(s, axis=2)
    o = jnp.einsum("bqk,bkd->bqd", p, vh)
    o = o.reshape(n_head, sz_b, len_q, d_v)
    o = jnp.transpose(o, (1, 2, 0, 3)).reshape(sz_b, len_q, n_head * d_v)
    o = o @ params["fc_w"].T + params["fc_b"]
    y = o + residual
    mu = jnp.mean(y, axis=-1, keepdims=True)
    var = jnp.mean((y - mu) ** 2, axis=-1, keepdims=True)
    y = (y - mu) / jnp.sqrt(var + 1e-5) * params["ln_w"] + params["ln_b"]
    return y, p


if __name__ == "__main__":
    # Small deterministic config
    n_head, d_model, d_k, d_v = 4, 32, 8, 8
    sz_b, seq_len = 2, 8

    key = jax.random.PRNGKey(0)
    keys = jax.random.split(key, 8)

    std_qk = np.sqrt(2.0 / (d_model + d_k))
    std_v = np.sqrt(2.0 / (d_model + d_v))
    xavier_std = np.sqrt(2.0 / (n_head * d_v + d_model))

    params = {
        "n_head": n_head, "d_k": d_k, "d_v": d_v,
        "w_qs": jax.random.normal(keys[0], (n_head * d_k, d_model), jnp.float32) * std_qk,
        "w_ks": jax.random.normal(keys[1], (n_head * d_k, d_model), jnp.float32) * std_qk,
        "w_vs": jax.random.normal(keys[2], (n_head * d_v, d_model), jnp.float32) * std_v,
        "fc_w": jax.random.normal(keys[3], (d_model, n_head * d_v), jnp.float32) * xavier_std,
        "fc_b": jax.random.normal(keys[4], (d_model,), jnp.float32) * 0.01,
        "ln_w": jnp.ones((d_model,), jnp.float32),
        "ln_b": jnp.zeros((d_model,), jnp.float32),
    }

    q = jax.random.normal(keys[5], (sz_b, seq_len, d_model), jnp.float32)
    k = jax.random.normal(keys[6], (sz_b, seq_len, d_model), jnp.float32)
    v = jax.random.normal(keys[7], (sz_b, seq_len, d_model), jnp.float32)

    # deterministic padding mask: batch 0 masks last 2 keys, batch 1 last 3
    valid = jnp.array([seq_len - 2, seq_len - 3])
    col = jnp.arange(seq_len)[None, None, :]
    mask = col >= valid[:, None, None]          # (sz_b, l_q, l_k) bool
    mask = jnp.broadcast_to(mask, (sz_b, seq_len, seq_len))

    # TODO(synk): dropout (attn_dropout + output dropout) is identity here
    # (eval-mode semantics); there is no trained-mode RNG dropout in-kernel.
    out, attn = multi_head_attention(params, q, k, v, mask)
    out = jax.block_until_ready(out)
    attn = jax.block_until_ready(attn)

    ref_out, ref_attn = reference_mha(params, q, k, v, mask)
    # Tolerances account for bf16 MXU operands + bf16 attn writeback + approx
    # reciprocal; the reference is the exact f32 computation.
    np.testing.assert_allclose(np.asarray(out, dtype=np.float32),
                               np.asarray(ref_out), rtol=5e-2, atol=5e-2)
    np.testing.assert_allclose(np.asarray(attn, dtype=np.float32),
                               np.asarray(ref_attn), rtol=5e-2, atol=5e-2)

    print("KERNEL_OK")
</pallas_src>

<mosaic_0001>
module attributes {stable_mosaic.version = 11 : i64} {
  func.func @_fused_mha_kernel(%arg0: i32, %arg1: i32, %arg2: memref<1x8x32xf32, #tpu.memory_space<vmem>>, %arg3: memref<1x8x32xbf16, #tpu.memory_space<vmem>>, %arg4: memref<1x8x32xbf16, #tpu.memory_space<vmem>>, %arg5: memref<1x8x8xbf16, #tpu.memory_space<vmem>>, %arg6: memref<1x32x8xbf16, #tpu.memory_space<vmem>>, %arg7: memref<1x32x8xbf16, #tpu.memory_space<vmem>>, %arg8: memref<1x32x8xbf16, #tpu.memory_space<vmem>>, %arg9: memref<1x8x32xbf16, #tpu.memory_space<vmem>>, %arg10: memref<1x32xf32, #tpu.memory_space<vmem>>, %arg11: memref<1x32xf32, #tpu.memory_space<vmem>>, %arg12: memref<1x32xf32, #tpu.memory_space<vmem>>, %arg13: memref<1x8x32xf32, #tpu.memory_space<vmem>>, %arg14: memref<1x1x8x8xbf16, #tpu.memory_space<vmem>>, %arg15: memref<8x32xf32, #tpu.memory_space<vmem>>) attributes {dimension_semantics = [#tpu.dimension_semantics<parallel>, #tpu.dimension_semantics<arbitrary>], iteration_bounds = array<i64: 2, 4>, scalar_prefetch = 0 : i64, scratch_operands = 1 : i64, tpu.core_type = #tpu.core_type<tc>, window_params = [{transform_indices = @transform_0, window_bounds = array<i64: 1, 8, 32>}, {transform_indices = @transform_1, window_bounds = array<i64: 1, 8, 32>}, {transform_indices = @transform_2, window_bounds = array<i64: 1, 8, 32>}, {transform_indices = @transform_3, window_bounds = array<i64: 1, 8, 8>}, {transform_indices = @transform_4, window_bounds = array<i64: 1, 32, 8>}, {transform_indices = @transform_5, window_bounds = array<i64: 1, 32, 8>}, {transform_indices = @transform_6, window_bounds = array<i64: 1, 32, 8>}, {transform_indices = @transform_7, window_bounds = array<i64: 1, 8, 32>}, {pipeline_mode = #tpu.pipeline_mode<synchronous>, transform_indices = @transform_8, window_bounds = array<i64: 1, 32>}, {pipeline_mode = #tpu.pipeline_mode<synchronous>, transform_indices = @transform_9, window_bounds = array<i64: 1, 32>}, {pipeline_mode = #tpu.pipeline_mode<synchronous>, transform_indices = @transform_10, window_bounds = array<i64: 1, 32>}, {transform_indices = @transform_11, window_bounds = array<i64: 1, 8, 32>}, {transform_indices = @transform_12, window_bounds = array<i64: 1, 1, 8, 8>}]} {
    %c0 = arith.constant 0 : index
    %c0_0 = arith.constant 0 : index
    %c0_1 = arith.constant 0 : index
    %0 = vector.load %arg2[%c0, %c0_0, %c0_1] : memref<1x8x32xf32, #tpu.memory_space<vmem>>, vector<1x8x32xf32>
    %1 = vector.shape_cast %0 : vector<1x8x32xf32> to vector<8x32xf32>
    %2 = arith.truncf %1 : vector<8x32xf32> to vector<8x32xbf16>
    %c0_2 = arith.constant 0 : index
    %c0_3 = arith.constant 0 : index
    %c0_4 = arith.constant 0 : index
    %3 = vector.load %arg3[%c0_2, %c0_3, %c0_4] : memref<1x8x32xbf16, #tpu.memory_space<vmem>>, vector<1x8x32xbf16>
    %4 = vector.shape_cast %3 : vector<1x8x32xbf16> to vector<8x32xbf16>
    %c0_5 = arith.constant 0 : index
    %c0_6 = arith.constant 0 : index
    %c0_7 = arith.constant 0 : index
    %5 = vector.load %arg4[%c0_5, %c0_6, %c0_7] : memref<1x8x32xbf16, #tpu.memory_space<vmem>>, vector<1x8x32xbf16>
    %6 = vector.shape_cast %5 : vector<1x8x32xbf16> to vector<8x32xbf16>
    %c0_8 = arith.constant 0 : index
    %c0_9 = arith.constant 0 : index
    %c0_10 = arith.constant 0 : index
    %7 = vector.load %arg6[%c0_8, %c0_9, %c0_10] : memref<1x32x8xbf16, #tpu.memory_space<vmem>>, vector<1x32x8xbf16>
    %8 = vector.shape_cast %7 : vector<1x32x8xbf16> to vector<32x8xbf16>
    %cst = arith.constant dense<0.000000e+00> : vector<8x8xf32>
    %9 = tpu.matmul %2, %8, %cst {dimension_numbers = #tpu.dot_dimension_numbers<[1], [0], [0], [1], [0, 0, 1, 1], [], []>} : vector<8x32xbf16>, vector<32x8xbf16>, vector<8x8xf32> -> vector<8x8xf32>
    %c0_11 = arith.constant 0 : index
    %c0_12 = arith.constant 0 : index
    %c0_13 = arith.constant 0 : index
    %10 = vector.load %arg7[%c0_11, %c0_12, %c0_13] : memref<1x32x8xbf16, #tpu.memory_space<vmem>>, vector<1x32x8xbf16>
    %11 = vector.shape_cast %10 : vector<1x32x8xbf16> to vector<32x8xbf16>
    %cst_14 = arith.constant dense<0.000000e+00> : vector<8x8xf32>
    %12 = tpu.matmul %4, %11, %cst_14 {dimension_numbers = #tpu.dot_dimension_numbers<[1], [0], [0], [1], [0, 0, 1, 1], [], []>} : vector<8x32xbf16>, vector<32x8xbf16>, vector<8x8xf32> -> vector<8x8xf32>
    %c0_15 = arith.constant 0 : index
    %c0_16 = arith.constant 0 : index
    %c0_17 = arith.constant 0 : index
    %13 = vector.load %arg8[%c0_15, %c0_16, %c0_17] : memref<1x32x8xbf16, #tpu.memory_space<vmem>>, vector<1x32x8xbf16>
    %14 = vector.shape_cast %13 : vector<1x32x8xbf16> to vector<32x8xbf16>
    %cst_18 = arith.constant dense<0.000000e+00> : vector<8x8xf32>
    %15 = tpu.matmul %6, %14, %cst_18 {dimension_numbers = #tpu.dot_dimension_numbers<[1], [0], [0], [1], [0, 0, 1, 1], [], []>} : vector<8x32xbf16>, vector<32x8xbf16>, vector<8x8xf32> -> vector<8x8xf32>
    %16 = arith.truncf %9 : vector<8x8xf32> to vector<8x8xbf16>
    %17 = arith.truncf %12 : vector<8x8xf32> to vector<8x8xbf16>
    %cst_19 = arith.constant dense<0.000000e+00> : vector<8x8xf32>
    %18 = tpu.matmul %16, %17, %cst_19 {dimension_numbers = #tpu.dot_dimension_numbers<[1], [1], [0], [0], [0, 0, 1, 0], [], []>} : vector<8x8xbf16>, vector<8x8xbf16>, vector<8x8xf32> -> vector<8x8xf32>
    %c0_20 = arith.constant 0 : index
    %c0_21 = arith.constant 0 : index
    %c0_22 = arith.constant 0 : index
    %19 = vector.load %arg5[%c0_20, %c0_21, %c0_22] : memref<1x8x8xbf16, #tpu.memory_space<vmem>>, vector<1x8x8xbf16>
    %20 = vector.shape_cast %19 : vector<1x8x8xbf16> to vector<8x8xbf16>
    %21 = arith.extf %20 : vector<8x8xbf16> to vector<8x8xf32>
    %cst_23 = arith.constant 0.000000e+00 : f32
    %22 = vector.broadcast %cst_23 : f32 to vector<8x8xf32>
    %23 = arith.cmpf one, %21, %22 : vector<8x8xf32>
    %cst_24 = arith.constant -1.000000e+10 : f32
    %24 = vector.broadcast %cst_24 : f32 to vector<8x8xf32>
    %25 = arith.select %23, %24, %18 : vector<8x8xi1>, vector<8x8xf32>
    %cst_25 = arith.constant dense<0xFF800000> : vector<8xf32>
    %26 = vector.multi_reduction <maximumf>, %25, %cst_25 [1] : vector<8x8xf32> to vector<8xf32>
    %27 = vector.shape_cast %26 : vector<8xf32> to vector<8x1xf32>
    %28 = vector.broadcast %27 : vector<8x1xf32> to vector<8x8xf32>
    %29 = arith.subf %25, %28 : vector<8x8xf32>
    %30 = math.exp %29 : vector<8x8xf32>
    %cst_26 = arith.constant dense<0.000000e+00> : vector<8xf32>
    %31 = vector.multi_reduction <add>, %30, %cst_26 [1] : vector<8x8xf32> to vector<8xf32>
    %32 = vector.shape_cast %31 : vector<8xf32> to vector<8x1xf32>
    %33 = tpu.reciprocal %32 {approx = true} : vector<8x1xf32> -> vector<8x1xf32>
    %34 = vector.broadcast %33 : vector<8x1xf32> to vector<8x8xf32>
    %35 = arith.mulf %30, %34 : vector<8x8xf32>
    %36 = arith.truncf %35 : vector<8x8xf32> to vector<8x8xbf16>
    %c0_27 = arith.constant 0 : index
    %c0_28 = arith.constant 0 : index
    %c0_29 = arith.constant 0 : index
    %c0_30 = arith.constant 0 : index
    %37 = vector.load %arg14[%c0_27, %c0_28, %c0_29, %c0_30] : memref<1x1x8x8xbf16, #tpu.memory_space<vmem>>, vector<1x1x8x8xbf16>
    %38 = vector.shape_cast %37 : vector<1x1x8x8xbf16> to vector<8x8xbf16>
    %39 = vector.shape_cast %36 : vector<8x8xbf16> to vector<1x1x8x8xbf16>
    tpu.vector_store %arg14[%c0_27, %c0_28, %c0_29, %c0_30], %39 {strides = array<i32>} : memref<1x1x8x8xbf16, #tpu.memory_space<vmem>>, vector<1x1x8x8xbf16>,
    %40 = arith.truncf %35 : vector<8x8xf32> to vector<8x8xbf16>
    %41 = arith.truncf %15 : vector<8x8xf32> to vector<8x8xbf16>
    %cst_31 = arith.constant dense<0.000000e+00> : vector<8x8xf32>
    %42 = tpu.matmul %40, %41, %cst_31 {dimension_numbers = #tpu.dot_dimension_numbers<[1], [0], [0], [1], [0, 0, 1, 1], [], []>} : vector<8x8xbf16>, vector<8x8xbf16>, vector<8x8xf32> -> vector<8x8xf32>
    %43 = arith.truncf %42 : vector<8x8xf32> to vector<8x8xbf16>
    %c0_32 = arith.constant 0 : index
    %c0_33 = arith.constant 0 : index
    %c0_34 = arith.constant 0 : index
    %44 = vector.load %arg9[%c0_32, %c0_33, %c0_34] : memref<1x8x32xbf16, #tpu.memory_space<vmem>>, vector<1x8x32xbf16>
    %45 = vector.shape_cast %44 : vector<1x8x32xbf16> to vector<8x32xbf16>
    %cst_35 = arith.constant dense<0.000000e+00> : vector<8x32xf32>
    %46 = tpu.matmul %43, %45, %cst_35 {dimension_numbers = #tpu.dot_dimension_numbers<[1], [0], [0], [1], [0, 0, 1, 1], [], []>} : vector<8x8xbf16>, vector<8x32xbf16>, vector<8x32xf32> -> vector<8x32xf32>
    %c0_i32 = arith.constant 0 : i32
    %47 = arith.cmpi eq, %arg1, %c0_i32 : i32
    %48 = arith.extui %47 : i1 to i32
    %c0_i32_36 = arith.constant 0 : i32
    %49 = arith.cmpi ne, %48, %c0_i32_36 : i32
    scf.if %49 {
      %c0_40 = arith.constant 0 : index
      %c0_41 = arith.constant 0 : index
      %56 = vector.load %arg15[%c0_40, %c0_41] : memref<8x32xf32, #tpu.memory_space<vmem>>, vector<8x32xf32>
      tpu.vector_store %arg15[%c0_40, %c0_41], %46 {strides = array<i32>} : memref<8x32xf32, #tpu.memory_space<vmem>>, vector<8x32xf32>,
    } else {
    }
    %c0_i32_37 = arith.constant 0 : i32
    %50 = arith.cmpi ne, %arg1, %c0_i32_37 : i32
    %51 = arith.extui %50 : i1 to i32
    %c0_i32_38 = arith.constant 0 : i32
    %52 = arith.cmpi ne, %51, %c0_i32_38 : i32
    scf.if %52 {
      %c0_40 = arith.constant 0 : index
      %c0_41 = arith.constant 0 : index
      %56 = vector.load %arg15[%c0_40, %c0_41] : memref<8x32xf32, #tpu.memory_space<vmem>>, vector<8x32xf32>
      %57 = arith.addf %56, %46 : vector<8x32xf32>
      %c0_42 = arith.constant 0 : index
      %c0_43 = arith.constant 0 : index
      %58 = vector.load %arg15[%c0_42, %c0_43] : memref<8x32xf32, #tpu.memory_space<vmem>>, vector<8x32xf32>
      tpu.vector_store %arg15[%c0_42, %c0_43], %57 {strides = array<i32>} : memref<8x32xf32, #tpu.memory_space<vmem>>, vector<8x32xf32>,
    } else {
    }
    %c3_i32 = arith.constant 3 : i32
    %53 = arith.cmpi eq, %arg1, %c3_i32 : i32
    %54 = arith.extui %53 : i1 to i32
    %c0_i32_39 = arith.constant 0 : i32
    %55 = arith.cmpi ne, %54, %c0_i32_39 : i32
    scf.if %55 {
      %c0_40 = arith.constant 0 : index
      %c0_41 = arith.constant 0 : index
      %56 = vector.load %arg15[%c0_40, %c0_41] : memref<8x32xf32, #tpu.memory_space<vmem>>, vector<8x32xf32>
      %c0_42 = arith.constant 0 : index
      %c0_43 = arith.constant 0 : index
      %57 = vector.load %arg10[%c0_42, %c0_43] : memref<1x32xf32, #tpu.memory_space<vmem>>, vector<1x32xf32>
      %58 = vector.broadcast %57 : vector<1x32xf32> to vector<8x32xf32>
      %59 = arith.addf %56, %58 : vector<8x32xf32>
      %60 = arith.addf %59, %1 : vector<8x32xf32>
      %cst_44 = arith.constant dense<0.000000e+00> : vector<8xf32>
      %61 = vector.multi_reduction <add>, %60, %cst_44 [1] : vector<8x32xf32> to vector<8xf32>
      %62 = vector.shape_cast %61 : vector<8xf32> to vector<8x1xf32>
      %cst_45 = arith.constant 3.200000e+01 : f32
      %63 = vector.broadcast %cst_45 : f32 to vector<8x1xf32>
      %64 = arith.divf %62, %63 : vector<8x1xf32>
      %65 = vector.broadcast %64 : vector<8x1xf32> to vector<8x32xf32>
      %66 = arith.subf %60, %65 : vector<8x32xf32>
      %67 = arith.mulf %66, %66 : vector<8x32xf32>
      %cst_46 = arith.constant dense<0.000000e+00> : vector<8xf32>
      %68 = vector.multi_reduction <add>, %67, %cst_46 [1] : vector<8x32xf32> to vector<8xf32>
      %69 = vector.shape_cast %68 : vector<8xf32> to vector<8x1xf32>
      %cst_47 = arith.constant 3.200000e+01 : f32
      %70 = vector.broadcast %cst_47 : f32 to vector<8x1xf32>
      %71 = arith.divf %69, %70 : vector<8x1xf32>
      %72 = vector.broadcast %64 : vector<8x1xf32> to vector<8x32xf32>
      %73 = arith.subf %60, %72 : vector<8x32xf32>
      %cst_48 = arith.constant 9.99999974E-6 : f32
      %74 = vector.broadcast %cst_48 : f32 to vector<8x1xf32>
      %75 = arith.addf %71, %74 : vector<8x1xf32>
      %76 = math.rsqrt %75 : vector<8x1xf32>
      %77 = vector.broadcast %76 : vector<8x1xf32> to vector<8x32xf32>
      %78 = arith.mulf %73, %77 : vector<8x32xf32>
      %c0_49 = arith.constant 0 : index
      %c0_50 = arith.constant 0 : index
      %79 = vector.load %arg11[%c0_49, %c0_50] : memref<1x32xf32, #tpu.memory_space<vmem>>, vector<1x32xf32>
      %80 = vector.broadcast %79 : vector<1x32xf32> to vector<8x32xf32>
      %81 = arith.mulf %78, %80 : vector<8x32xf32>
      %c0_51 = arith.constant 0 : index
      %c0_52 = arith.constant 0 : index
      %82 = vector.load %arg12[%c0_51, %c0_52] : memref<1x32xf32, #tpu.memory_space<vmem>>, vector<1x32xf32>
      %83 = vector.broadcast %82 : vector<1x32xf32> to vector<8x32xf32>
      %84 = arith.addf %81, %83 : vector<8x32xf32>
      %c0_53 = arith.constant 0 : index
      %c0_54 = arith.constant 0 : index
      %c0_55 = arith.constant 0 : index
      %85 = vector.load %arg13[%c0_53, %c0_54, %c0_55] : memref<1x8x32xf32, #tpu.memory_space<vmem>>, vector<1x8x32xf32>
      %86 = vector.shape_cast %85 : vector<1x8x32xf32> to vector<8x32xf32>
      %87 = vector.shape_cast %84 : vector<8x32xf32> to vector<1x8x32xf32>
      tpu.vector_store %arg13[%c0_53, %c0_54, %c0_55], %87 {strides = array<i32>} : memref<1x8x32xf32, #tpu.memory_space<vmem>>, vector<1x8x32xf32>,
    } else {
    }
    return
  }
  func.func @transform_0(%arg0: i32, %arg1: i32) -> (i32, i32, i32) {
    %c0_i32 = arith.constant 0 : i32
    %c0_i32_0 = arith.constant 0 : i32
    %c0_i32_1 = arith.constant 0 : i32
    return %arg0, %c0_i32, %c0_i32_0 : i32, i32, i32
  }
  func.func @transform_1(%arg0: i32, %arg1: i32) -> (i32, i32, i32) {
    %c0_i32 = arith.constant 0 : i32
    %c0_i32_0 = arith.constant 0 : i32
    %c0_i32_1 = arith.constant 0 : i32
    return %arg0, %c0_i32, %c0_i32_0 : i32, i32, i32
  }
  func.func @transform_2(%arg0: i32, %arg1: i32) -> (i32, i32, i32) {
    %c0_i32 = arith.constant 0 : i32
    %c0_i32_0 = arith.constant 0 : i32
    %c0_i32_1 = arith.constant 0 : i32
    return %arg0, %c0_i32, %c0_i32_0 : i32, i32, i32
  }
  func.func @transform_3(%arg0: i32, %arg1: i32) -> (i32, i32, i32) {
    %c0_i32 = arith.constant 0 : i32
    %c0_i32_0 = arith.constant 0 : i32
    %c0_i32_1 = arith.constant 0 : i32
    return %arg0, %c0_i32, %c0_i32_0 : i32, i32, i32
  }
  func.func @transform_4(%arg0: i32, %arg1: i32) -> (i32, i32, i32) {
    %c0_i32 = arith.constant 0 : i32
    %c0_i32_0 = arith.constant 0 : i32
    %c0_i32_1 = arith.constant 0 : i32
    return %arg1, %c0_i32, %c0_i32_0 : i32, i32, i32
  }
  func.func @transform_5(%arg0: i32, %arg1: i32) -> (i32, i32, i32) {
    %c0_i32 = arith.constant 0 : i32
    %c0_i32_0 = arith.constant 0 : i32
    %c0_i32_1 = arith.constant 0 : i32
    return %arg1, %c0_i32, %c0_i32_0 : i32, i32, i32
  }
  func.func @transform_6(%arg0: i32, %arg1: i32) -> (i32, i32, i32) {
    %c0_i32 = arith.constant 0 : i32
    %c0_i32_0 = arith.constant 0 : i32
    %c0_i32_1 = arith.constant 0 : i32
    return %arg1, %c0_i32, %c0_i32_0 : i32, i32, i32
  }
  func.func @transform_7(%arg0: i32, %arg1: i32) -> (i32, i32, i32) {
    %c0_i32 = arith.constant 0 : i32
    %c0_i32_0 = arith.constant 0 : i32
    %c0_i32_1 = arith.constant 0 : i32
    return %arg1, %c0_i32, %c0_i32_0 : i32, i32, i32
  }
  func.func @transform_8(%arg0: i32, %arg1: i32) -> (i32, i32) {
    %c0_i32 = arith.constant 0 : i32
    %c0_i32_0 = arith.constant 0 : i32
    %c0_i32_1 = arith.constant 0 : i32
    return %c0_i32, %c0_i32_0 : i32, i32
  }
  func.func @transform_9(%arg0: i32, %arg1: i32) -> (i32, i32) {
    %c0_i32 = arith.constant 0 : i32
    %c0_i32_0 = arith.constant 0 : i32
    %c0_i32_1 = arith.constant 0 : i32
    return %c0_i32, %c0_i32_0 : i32, i32
  }
  func.func @transform_10(%arg0: i32, %arg1: i32) -> (i32, i32) {
    %c0_i32 = arith.constant 0 : i32
    %c0_i32_0 = arith.constant 0 : i32
    %c0_i32_1 = arith.constant 0 : i32
    return %c0_i32, %c0_i32_0 : i32, i32
  }
  func.func @transform_11(%arg0: i32, %arg1: i32) -> (i32, i32, i32) {
    %c0_i32 = arith.constant 0 : i32
    %c0_i32_0 = arith.constant 0 : i32
    %c0_i32_1 = arith.constant 0 : i32
    return %arg0, %c0_i32, %c0_i32_0 : i32, i32, i32
  }
  func.func @transform_12(%arg0: i32, %arg1: i32) -> (i32, i32, i32, i32) {
    %c0_i32 = arith.constant 0 : i32
    %c0_i32_0 = arith.constant 0 : i32
    %c0_i32_1 = arith.constant 0 : i32
    return %arg1, %arg0, %c0_i32, %c0_i32_0 : i32, i32, i32, i32
  }
}

</mosaic_0001>

<bundles_post_ra>
// kernel: tpu_custom_call.1
= control target key start
LH: loop header
LB: loop body
LE: loop exit
PB: predicated region body
PF: predicated region fallthrough
CT: control target
= control target key end

     0   :  { %s1946_s0 = inlined_call_operand.vmem [shape: f32[2,8,32], index: 0, kind: input, shape index: {}]   ;;  %s1947_s1 = inlined_call_operand.vmem [shape: bf16[2,8,32], index: 1, kind: input, shape index: {}]   ;;  %s1948_s2 = inlined_call_operand.vmem [shape: bf16[2,8,32], index: 2, kind: input, shape index: {}]   ;;  %s1949_s3 = inlined_call_operand.vmem [shape: bf16[2,8,8], index: 3, kind: input, shape index: {}]   ;;  %s1950_s4 = inlined_call_operand.vmem [shape: bf16[4,32,8], index: 4, kind: input, shape index: {}]   ;;  %s1951_s5 = inlined_call_operand.vmem [shape: bf16[4,32,8], index: 5, kind: input, shape index: {}]   ;;  %s1952_s6 = inlined_call_operand.vmem [shape: bf16[4,32,8], index: 6, kind: input, shape index: {}]   ;;  %s1953_s7 = inlined_call_operand.vmem [shape: bf16[4,8,32], index: 7, kind: input, shape index: {}]   ;;  %s1954_s8 = inlined_call_operand.vmem [shape: f32[1,32], index: 8, kind: input, shape index: {}]   ;;  %s1955_s9 = inlined_call_operand.vmem [shape: f32[1,32], index: 9, kind: input, shape index: {}]   ;;  %s1956_s10 = inlined_call_operand.vmem [shape: f32[1,32], index: 10, kind: input, shape index: {}]   ;;  %s1957_s11 = inlined_call_operand.hbm [shape: f32[2,8,32], index: 11, kind: output, shape index: {0}]   ;;  %s1958_s12 = inlined_call_operand.hbm [shape: bf16[4,2,8,8], index: 12, kind: output, shape index: {1}]  }
   0x1   :  { %1974 = sst [smem:[#allocation20_spill]] %s1946_s0 }
   0x2   :  { %1975 = sst [smem:[#allocation21_spill]] %s1947_s1 }
   0x3   :  { %1976 = sst [smem:[#allocation22_spill]] %s1950_s4 }
   0x4   :  { %1977 = sst [smem:[#allocation23_spill]] %s1955_s9 }
   0x5   :  { %1978 = sst [smem:[#allocation24_spill]] %s1956_s10 }
   0x6   :  { %1979 = sst [smem:[#allocation25_spill]] %s1957_s11 }
   0x7   :  { %1980 = sst [smem:[#allocation26_spill]] %s1958_s12 }
   0x8   :  { %18 = vsyncpa [#allocation4], 0 }
   0x9   :  { %20 = vsyncpa [#allocation4 + $0x1], 0 }
   0xa   :  { %21 = vsyncpa [#allocation6], 0 }
   0xb   :  { %23 = vsyncpa [#allocation6 + $0x1], 0  ;;  %s1625_s21 = smov 0   ;;  %s1627_s22 = smov 0  }
   0xc   :  { %s1629_s23 = smov 0   ;;  %s1631_s24 = smov 0  }
   0xd   :  { %s1633_s25 = smov 0   ;;  %s1635_s26 = smov 0  }
   0xe   :  { %s1637_s27 = smov 0   ;;  %s1639_s28 = smov 0  }
   0xf   :  { %s1641_s29 = smov 0   ;;  %s1643_s30 = smov 0  }
  0x10   :  { %s1645_s13 = smov 0  }
  0x11 LB: > { %1981 = sst [smem:[#allocation9_spill]] %s1522_s23  ;;  %s1187_s14 = sadd.s32 4294967295, %s1554_s13   ;;  %s1554_s13 = sphi %s1645_s13, %s29_s13   ;;  %s1550_s30 = sphi %s1643_s30, %s2020_s30   ;;  %s1546_s29 = sphi %s1641_s29, %s2019_s29   ;;  %s1542_s28 = sphi %s1639_s28, %s2018_s28   ;;  %s1538_s27 = sphi %s1637_s27, %s2017_s27   ;;  %s1534_s26 = sphi %s1635_s26, %s2016_s26   ;;  %s1530_s25 = sphi %s1633_s25, %s2024_s25   ;;  %s1526_s24 = sphi %s1631_s24, %s2023_s24   ;;  %s1522_s23 = sphi %s1629_s23, %s2014_s23   ;;  %s1518_s22 = sphi %s1627_s22, %s2022_s22   ;;  %s1514_s21 = sphi %s1625_s21, %s2021_s21  }
  0x12   : > { %1982 = sst [smem:[#allocation10_spill]] %s1526_s24  ;;  %s1188_s15 = sadd.s32 4294967294, %s1554_s13  }
  0x13   : > { %1983 = sst [smem:[#allocation11_spill]] %s1534_s26  ;;  %s38_s16 = sadd.s32 1, %s1546_s29 }
  0x14   : > { %1984 = sst [smem:[#allocation12_spill]] %s1546_s29  ;;  %s41_s17 = sadd.s32 1, %s1550_s30 }
  0x15   : > { %1985 = sst [smem:[#allocation13_spill]] %s1550_s30  ;;  %p39_p0 = scmp.ge.s32.totalorder %s38_s16, 4 }
  0x16   : > { %s319_s18 = sadd.s32 1, %s1534_s26  ;;  %p329_p1 = scmp.ne.s32.totalorder %s1534_s26, %s1530_s25 }
  0x17   : > { %p1687_p2 = scmp.eq.s32.totalorder %s1187_s14, 7  ;;  %s2026_s16 = smov (%p39_p0, %s38_s16), 0 }
  0x18   : > { %1987 = sst [smem:[#allocation14_spill]] %s2026_s16  ;;  %s2028_s17 = smov (!%p39_p0, %s41_s17), %s1550_s30 }
  0x19   : > { %p1696_p3 = por %p1687_p2, %p329_p1  ;;  %p335_p4 = scmp.ne.s32.totalorder %s1530_s25, %s1526_s24 }
  0x1a   : > { %p43_p5 = scmp.ge.s32.totalorder %s2028_s17, 2  ;;  %p1702_p6 = scmp.eq.s32.totalorder %s1188_s15, 7 }
  0x1b   : > { %s1988_s20 = scalar_select %p1696_p3, 1, 0 }
  0x1c   : > { %s342_s12 = ssub.s32 %s1546_s29, %s2026_s16  ;;  %s347_s11 = sadd.s32 1, %s1522_s23 }
  0x1d   : > { %1989 = sst [smem:[#allocation15_spill]] %s1988_s20  ;;  %s2030_s17 = smov (%p43_p5, %s2028_s17), 0 }
  0x1e   : > { %1991 = sst [smem:[#allocation16_spill]] %s2030_s17  ;;  %p1713_p7 = por %p1702_p6, %p335_p4 }
  0x1f   : > { %p357_p8 = scmp.ne.s32.totalorder %s1522_s23, %s1518_s22  ;;  %s316_s24 = ssub.s32 %s1550_s30, %s2030_s17 }
  0x20   : > { %p363_p9 = scmp.ne.s32.totalorder %s1518_s22, %s1514_s21  ;;  %p317_p10 = scmp.eq.s32.totalorder %s316_s24, 0 }
  0x21   : > { %s344_s15 = sor.u32 %s342_s12, %s316_s24  ;;  %p1725_p12 = por %p357_p8, %p1687_p2 }
  0x22   : > { %p345_p11 = scmp.eq.s32.totalorder %s344_s15, 0  ;;  %p1737_p13 = por %p363_p9, %p1702_p6 }
  0x23   : > { %s1730_s16 = scalar_select %p317_p10, %s1534_s26, %s319_s18  }
  0x24   : > { %s1733_s29 = scalar_select %p345_p11, %s1522_s23, %s347_s11  }
  0x25   : > { %1994 = sst [smem:[#allocation17_spill]] %s1730_s16  ;;  %p1191_p0 = scmp.ge.s32.totalorder %s1554_s13, 1 }
  0x26   : > { %1995 = sst [smem:[#allocation18_spill]] %s1733_s29  ;;  %p450_p1 = scmp.lt.s32.totalorder %s1554_s13, 9 }
  0x27   : > { %s1996_s9 = scalar_select %p1737_p13, 1, 0 }
  0x28   : > { %p451_p4 = pnand %p1191_p0, %p450_p1 }
  0x29   : > { %1997 = sst [smem:[#allocation19_spill]] %s1996_s9  ;;  %p543_p2 = scmp.lt.s32.totalorder (!%p451_p4), %s1538_s27, 3  ;;  %v1556_v0 = vmov (!%p451_p4), 0.0   ;;  %vm1557_vm0 = vmmov (!%p451_p4), 0   ;;  %vm583_vm1 = vcmask (!%p451_p4), 261120   ;;  %vm747_vm2 = vcmask (!%p451_p4), 64512  }
  0x2a   : > { %454 = sbr.rel (%p451_p4) target bundleno = 1629 (0x65d), region = 64  ;;  %s1966_s12 = sand.u32 (!%p451_p4), 1, %s1530_s25   ;;  %1256 = vmatprep.subr.bf16.mxu1 (!%p451_p4), %v1556_v0  ;;  %1248 = vmatprep.subr.bf16.mxu0 (!%p451_p4), %v1556_v0  ;;  %vm816_vm4 = vcmask (!%p451_p4), 1043456   ;;  %vm810_vm5 = vcmask (!%p451_p4), 60416  }
  0x2b   : > { %s1748_s11 = sshll.u32 (!%p451_p4), %s1966_s12, 3  ;;  %1260 = vmatprep.mubr.msk.bf16.mxu1 (!%p451_p4), %vm1557_vm0, %v1556_v0  ;;  %1252 = vmatprep.mubr.msk.bf16.mxu0 (!%p451_p4), %vm1557_vm0, %v1556_v0  ;;  %p527_p5 = scmp.lt.s32.totalorder (!%p451_p4), %s1542_s28, 1 }
  0x2c   : > { %s1998_s4 = sld [smem:[#allocation22_spill]] (!%p451_p4)  ;;  %s1999_s1 = sld [smem:[#allocation21_spill]] (!%p451_p4) }
  0x2d   : > { %s2000_s0 = sld [smem:[#allocation20_spill]] (!%p451_p4)  ;;  %p1217_p6 = scmp.ne.s32.totalorder (!%p451_p4), %s1538_s27, 0 }
  0x31   : > { %s1752_s24 = scalar_select %p543_p2, %s1538_s27, 3 }
  0x32   : > { %s528_s16 = scalar_select %p527_p5, %s1542_s28, 1 }
  0x33   : > { %s1230_s18 = sshll.u32 %s1752_s24, 4 }
  0x34   : > { %s552_s15 = scalar_lea.vmem %s1951_s5, %s1230_s18  ;;  %s547_s30 = scalar_lea.vmem %s1998_s4, %s1230_s18 }
  0x35   : > { %v1392_v1 = vld [vmem:[%s552_s15] sm:$0xff]   ;;  %v1393_v2 = vld [vmem:[%s552_s15 + $0x8] sm:$0xff]   ;;  %s1770_s23 = scalar_lea.vmem %s1952_s6, %s1230_s18  ;;  %s1773_s9 = sshll.u32 %s528_s16, 2 }
  0x36   : > { %1257 = vmatpush3.bf16.msra.mxu1 %v1392_v1  ;;  %v1394_v3 = vld [vmem:[%s547_s30] sm:$0xff]   ;;  %s534_s17 = scalar_lea.vmem %s1999_s1, %s1773_s9  ;;  %v1395_v4 = vld [vmem:[%s547_s30 + $0x8] sm:$0xff]   ;;  %s1194_s12 = sshll.u32 %s528_s16, 3 }
  0x37   : > { %1258 = vmatprep.subr.bf16.mxu1 %v1556_v0  ;;  %1249 = vmatpush3.bf16.msra.mxu0 %v1394_v3  ;;  %s530_s26 = scalar_lea.vmem %s2000_s0, %s1194_s12  ;;  %v565_v5 = vld [vmem:[%s534_s17] sm:$0xf]  ;;  %v1397_v20 = vld [vmem:[%s1770_s23 + $0x8] sm:$0xff]   ;;  %s538_s30 = scalar_lea.vmem %s1948_s2, %s1773_s9 }
  0x38   : > { %1250 = vmatprep.subr.bf16.mxu0 %v1556_v0  ;;  %v1783_v6 = vld [vmem:[%s530_s26] sm:$0xff]  ;;  %s542_s19 = scalar_lea.vmem %s1949_s3, %s1773_s9  ;;  %s1204_s9 = sshll.u32 %s1752_s24, 2 }
  0x39   : > { %v564_v7 = vpack.c.bf16 %v1783_v6, %v1783_v6  ;;  %v1396_v19 = vld [vmem:[%s1770_s23] sm:$0xff]   ;;  %s561_s17 = scalar_lea.vmem %s1953_s7, %s1204_s9  ;;  %s1972_s12 = sand.u32 1, %s1518_s22  }
  0x3a   : > { %1259 = vmatpush3.bf16.msra.mxu1 %v1393_v2  ;;  %v566_v21 = vld [vmem:[%s538_s30] sm:$0xf]  ;;  %s1824_s15 = sshll.u32 %s1972_s12, 2  ;;  %s519_s26 = scalar_lea.vmem [#allocation3], %s1748_s11 }
  0x3b   : > { %1272 = vmatprep.subr.bf16.mxu1 %v1556_v0  ;;  %1251 = vmatpush3.bf16.msra.mxu0 %v1395_v4  ;;  %v794_v22 = vld [vmem:[%s542_s19] sm:$0xf]  ;;  %s1973_s24 = scalar_lea.vmem [#allocation5], %s1824_s15 }
  0x3c   : > { %1264 = vmatprep.subr.bf16.mxu0 %v1556_v0  ;;  %v795_v23 = vunpack.c.l.bf16 %v794_v22  ;;  %v861_v41 = vld [vmem:[%s561_s17] sm:$0xf] }
  0x3d   : > { %1261 = vmatmul.mubr.msk.bf16.vlgmr.msra.gmra.mrb[0].mxu1 %vm583_vm1, %v565_v5  ;;  %v866_v42 = vsel %vm816_vm4, %v861_v41, 0 }
  0x3e   : > { %1274 = vmatprep.mubr.msk.bf16.mxu1 %vm1557_vm0, %v1556_v0  ;;  %1253 = vmatmul.mubr.msk.bf16.vlgmr.msra.gmra.mrb[0].mxu0 %vm583_vm1, %v564_v7  ;;  %vm796_vm3 = vcmp.ne.f32.partialorder %v795_v23, 0.0 }
  0x3f   : > { %1268 = vmatprep.mubr.msk.bf16.mxu0 %vm1557_vm0, %v1556_v0  ;;  %1265 = vmatpush3.bf16.msra.mxu0 %v1396_v19 }
  0x40   : > { %1266 = vmatprep.subr.bf16.mxu0 %v1556_v0 }
  0x43   : > { %1267 = vmatpush3.bf16.msra.mxu0 %v1397_v20 }
  0x44   : > { %1278 = vmatprep.subr.bf16.mxu0 %v1556_v0 }
  0x46   : > { %1269 = vmatmul.mubr.msk.bf16.vlgmr.msra.gmra.mrb[4].mxu0 %vm583_vm1, %v566_v21 }
  0x47   : > { %1280 = vmatprep.mubr.msk.bf16.mxu0 %vm1557_vm0, %v1556_v0 }
 0x110   : > { %v680_v8 = vpop.f32.mrb[0].mxu1 }
 0x111   : > { %v746_v9 = vpack.c.bf16 %v680_v8, %v680_v8  ;;  %v1262_v10 = vpop.f32.mrb[1].mxu1  ;;  %v621_v12 = vpop.f32.mrb[0].mxu0 }
 0x112   : > { %v683_v11 = vpop.f32.mrb[2].mxu1  ;;  %v1254_v15 = vpop.f32.mrb[1].mxu0  ;;  %v745_v18 = vpack.c.bf16 %v621_v12, %v621_v12 }
 0x113   : > { %v752_v13 = vsel %vm747_vm2, %v746_v9, 0  ;;  %v1263_v14 = vpop.f32.mrb[3].mxu1  ;;  %v624_v16 = vpop.f32.mrb[2].mxu0 }
 0x114   : > { %1273 = vmatpush3.bf16.xpose.msra.mxu1 %v752_v13  ;;  %v1255_v17 = vpop.f32.mrb[3].mxu0 }
 0x115   : > { %1284 = vmatprep.subr.bf16.mxu1 %v1556_v0 }
 0x119   : > { %v739_v35 = vpop.f32.mrb[4].mxu0 }
 0x11a   : > { %v1270_v36 = vpop.f32.mrb[5].mxu0  ;;  %v812_v39 = vpack.c.bf16 %v739_v35, %v739_v35 }
 0x11b   : > { %1275 = vmatmul.mubr.msk.bf16.vlgmr.msra.gmra.mrb[4].mxu1 %vm747_vm2, %v745_v18  ;;  %v742_v37 = vpop.f32.mrb[6].mxu0 }
 0x11c   : > { %1286 = vmatprep.mubr.msk.bf16.mxu1 %vm1557_vm0, %v1556_v0  ;;  %v1271_v38 = vpop.f32.mrb[7].mxu0  ;;  %v818_v40 = vsel %vm816_vm4, %v812_v39, 0  ;;  %1285 = vmatpush3.bf16.msra.mxu1 %v866_v42 }
 0x11d   : > { %1279 = vmatpush3.bf16.msra.mxu0 %v818_v40 }
 0x1ee   : > { %v788_v24 = vpop.f32.mrb[4].mxu1 }
 0x1ef   : > { %v797_v25 = vsel %vm796_vm3, -1e+10, %v788_v24  ;;  %v1276_v26 = vpop.f32.mrb[5].mxu1 }
 0x1f0   : > { %v791_v27 = vpop.f32.mrb[6].mxu1  ;;  %v798_v28 = vsel %vm747_vm2, %v797_v25, -inf }
 0x1f1   : > { %799 = vmax.xlane.f32.xlu0 %v798_v28  ;;  %v1277_v29 = vpop.f32.mrb[7].mxu1 }
 0x27e   : > { %v800_v30 = vpop.xlane.xlu0 %799 }
 0x27f   : > { %v801_v31 = vsub.f32 %v797_v25, %v800_v30 }
 0x281   : > { %v802_v32 = vmul.f32 1.442695, %v801_v31 }
 0x283   : > { %1398 = vpow2.f32 %v802_v32 }
 0x28d   : > { %v1399_v33 = vpop.eup %1398 }
 0x28e   : > { %v804_v34 = vsel %vm747_vm2, %v1399_v33, 0.0 }
 0x28f   : > { %805 = vadd.xlane.f32.xlu0 %v804_v34 }
 0x31c   : > { %v806_v43 = vpop.xlane.xlu0 %805 }
 0x31d   : > { %1400 = vrcp.f32 %v806_v43 }
 0x327   : > { %v1401_v44 = vpop.eup %1400 }
 0x328   : > { %v808_v45 = vmul.f32 %v1401_v44, %v1399_v33 }
 0x32a   : > { %v809_v46 = vpack.c.bf16 %v808_v45, %v808_v45 }
 0x32c   : > { %811 = vst.msk [vmem:[%s1973_s24] sm:$0xf] %vm810_vm5, %v809_v46  ;;  %1281 = vmatmul.mubr.msk.bf16.vlgmr.msra.gmra.mrb[8].mxu0 %vm747_vm2, %v809_v46 }
 0x3ff   : > { %v854_v47 = vpop.f32.mrb[8].mxu0 }
 0x400   : > { %v860_v48 = vpack.c.bf16 %v854_v47, %v854_v47  ;;  %v1282_v49 = vpop.f32.mrb[9].mxu0 }
 0x401   : > { %v857_v50 = vpop.f32.mrb[10].mxu0 }
 0x402   : > { %v1283_v51 = vpop.f32.mrb[11].mxu0  ;;  %1287 = vmatmul.mubr.msk.bf16.vlgmr.msra.gmra.mrb[8].mxu1 %vm747_vm2, %v860_v48 }
 0x4d2   : > { %911 = sbr.rel (%p1217_p6) target bundleno = 1241 (0x4d9), region = 68 }
 0x4d5   : > { %v902_v52 = vpop.f32.mrb[8].mxu1 }
 0x4d6   : > { %v1288_v53 = vpop.f32.mrb[9].mxu1  ;;  %912 = vst.msk [vmem:[#allocation2] sm:$0xff] (!%p1217_p6), %vm583_vm1, %v902_v52 }
 0x4d7   : > { %v905_v54 = vpop.f32.mrb[10].mxu1 }
 0x4d8   : > { %v1289_v55 = vpop.f32.mrb[11].mxu1 }
 0x4d9 PF: > { %p1218_p8 = scmp.eq.s32.totalorder %s1538_s27, 0 }
 0x4db   : > { %916 = sbr.rel (%p1218_p8) target bundleno = 1250 (0x4e2), region = 72 }
 0x4dd   : > { %v917_v56 = vld [vmem:[#allocation2] sm:$0xff] (!%p1218_p8) }
 0x4de   : > { %v918_v57 = vadd.f32 (!%p1218_p8), %v917_v56, %v902_v52 }
 0x4e0   : > { %919 = vst.msk [vmem:[#allocation2] sm:$0xff] (!%p1218_p8), %vm583_vm1, %v918_v57 }
 0x4e2 PF: > { %p1219_p9 = scmp.ne.s32.totalorder %s1538_s27, 3 }
 0x4e3   : > { %v1220_v59 = vld [vmem:[%s1954_s8] ss:$0 sm:$0xff] (!%p1219_p9)  ;;  %s2001_s18 = sld [smem:[#allocation23_spill]] (!%p1219_p9)  ;;  %s2002_s23 = sld [smem:[#allocation24_spill]] (!%p1219_p9) }
 0x4e4   : > { %923 = sbr.rel (%p1219_p9) target bundleno = 1574 (0x626), region = 76 }
 0x4e7   : > { %v924_v58 = vld [vmem:[#allocation2] sm:$0xff] (!%p1219_p9) }
 0x4e8   : > { %v932_v60 = vadd.f32 (!%p1219_p9), %v1220_v59, %v924_v58 }
 0x4e9   : > { %v1222_v10 = vld [vmem:[%s2002_s23] ss:$0 sm:$0xff] (!%p1219_p9) }
 0x4ea   : > { %v933_v61 = vadd.f32 (!%p1219_p9), %v932_v60, %v1783_v6  ;;  %v1221_v6 = vld [vmem:[%s2001_s18] ss:$0 sm:$0xff] (!%p1219_p9) }
 0x4ec   : > { %v934_v62 = vsel %vm583_vm1, %v933_v61, 0.0 }
 0x4ed   : > { %935 = vadd.xlane.f32.xlu0 %v934_v62 }
 0x57a   : > { %v936_v63 = vpop.xlane.xlu0 %935 }
 0x57b   : > { %v938_v0 = vmul.f32 0.03125, %v936_v63 }
 0x57d   : > { %v939_v1 = vsub.f32 %v933_v61, %v938_v0 }
 0x57f   : > { %v940_v2 = vmul.f32 %v939_v1, %v939_v1 }
 0x581   : > { %v941_v3 = vsel %vm583_vm1, %v940_v2, 0.0 }
 0x582   : > { %942 = vadd.xlane.f32.xlu0 %v941_v3 }
 0x60f   : > { %v943_v4 = vpop.xlane.xlu0 %942 }
 0x610   : > { %v944_v5 = vmul.f32 0.03125, %v943_v4 }
 0x612   : > { %v945_v7 = vadd.f32 1e-05, %v944_v5 }
 0x614   : > { %1402 = vrsqrt.f32 %v945_v7 }
 0x61e   : > { %v1403_v8 = vpop.eup %1402 }
 0x61f   : > { %v947_v9 = vmul.f32 %v1403_v8, %v939_v1 }
 0x621   : > { %v955_v11 = vmul.f32 %v1221_v6, %v947_v9 }
 0x623   : > { %v963_v12 = vadd.f32 %v1222_v10, %v955_v11 }
 0x625   : > { %964 = vst.msk [vmem:[%s519_s26] sm:$0xff] %vm583_vm1, %v963_v12 }
 0x626 PF: > { %s1225_s17 = sshll.u32 %s1542_s28, 7  ;;  %s2004_s30 = sld [smem:[#allocation25_spill]] }
 0x627   : > { %s984_s12 = sshll.u32 %s519_s26, 4  ;;  %s2006_s19 = sand.u32 1, %s1530_s25   ;;  %s985_s12 = int_to_ptr.vmem [resolvable:$true] %s984_s12 }
 0x628   : > { %s966_s9 = scalar_lea.sflag [#allocation4], %s2006_s19  ;;  %s1404_s23 = scalar_lea.vmem %s985_s12, 128 }
 0x629   : > { %p1405_p10 = scmp.ne.s32.totalorder %s985_s12, %s1404_s23  ;;  %s1558_s24 = smov [#allocation3]  }
 0x62a   : > { %s1408_s0 = sshll.u32 %s1558_s24, 4  ;;  %s1409_s0 = int_to_ptr.vmem [resolvable:$false] %s1408_s0 }
 0x62b   : > { %p1406_p11 = pnand %p1405_p10, %p1696_p3  ;;  %s1410_s1 = scalar_lea.vmem %s1409_s0, 256 }
 0x62c   : > { %s2005_s16 = smov %s2004_s30  ;;  %s1856_s18 = scalar_lea.hbm %s2004_s30, %s1225_s17 }
 0x62d   : > { %p1407_p0 = pneg %p1406_p11  ;;  %p1411_p1 = scmp.lt.s32.totalorder %s985_s12, %s1409_s0 }
 0x62e   : > { %p1412_p4 = scmp.lt.s32.totalorder %s1410_s1, %s1404_s23 }
 0x630   : > { %p1413_p2 = por %p1412_p4, %p1411_p1 }
 0x632   : > { %p1414_p5 = pnand %p1413_p2, %p1407_p0 }
 0x634   : > { %1417 = shalt.err (!%p1414_p5)
}
 0x635   : > { %s1418_s11 = scalar_lea.hbm %s1856_s18, 128  ;;  %s1422_s24 = scalar_lea.hbm %s2005_s16, 256 }
 0x636   : > { %p1419_p6 = scmp.ne.s32.totalorder %s1856_s18, %s1418_s11  ;;  %p1423_p10 = scmp.lt.u32.totalorder %s1856_s18, %s2005_s16 }
 0x637   : > { %p1424_p11 = scmp.lt.u32.totalorder %s1422_s24, %s1418_s11  ;;  %p1426_p1 = scmp.lt.u32.totalorder %s1418_s11, %s1856_s18 }
 0x638   : > { %p1420_p8 = pnand %p1419_p6, %p1696_p3 }
 0x639   : > { %p1425_p0 = por %p1424_p11, %p1423_p10 }
 0x63a   : > { %p1421_p9 = pneg %p1420_p8 }
 0x63b   : > { %p1427_p4 = por %p1426_p1, %p1425_p0 }
 0x63d   : > { %p1428_p2 = pnand %p1427_p4, %p1421_p9 }
 0x63f   : > { %1431 = shalt.err (!%p1428_p2)
}
 0x640   : > { %1290 = dma.vmem_to_hbm [thread:$0]  (%p1696_p3), %s985_s12, 128, %s1856_s18, %s966_s9  }
 0x641   : > { %s1226_s1 = sshll.u32 %s1538_s27, 1  ;;  %s2007_s29 = scalar_lea.vmem [#allocation5], %s1824_s15 }
 0x642   : > { %s999_s30 = sshll.u32 %s2007_s29, 4  ;;  %s995_s19 = sadd.s32 %s1542_s28, %s1226_s1  ;;  %s1883_s30 = int_to_ptr.vmem [resolvable:$true] %s999_s30 }
 0x643   : > { %s1227_s23 = sshll.u32 %s995_s19, 6  ;;  %s2008_s14 = sld [smem:[#allocation26_spill]] }
 0x644   : > { %s2009_s24 = sand.u32 1, %s1518_s22   ;;  %s1432_s0 = scalar_lea.vmem %s1883_s30, 64 }
 0x645   : > { %s971_s4 = scalar_lea.sflag [#allocation6], %s2009_s24  ;;  %p1433_p5 = scmp.ne.s32.totalorder %s1883_s30, %s1432_s0 }
 0x646   : > { %s1559_s27 = smov [#allocation5]  }
 0x647   : > { %p1434_p3 = pnand %p1433_p5, %p1725_p12  ;;  %s1436_s12 = sshll.u32 %s1559_s27, 4  ;;  %s1437_s12 = int_to_ptr.vmem [resolvable:$false] %s1436_s12 }
 0x648   : > { %s1438_s28 = scalar_lea.vmem %s1437_s12, 128  ;;  %p1439_p8 = scmp.lt.s32.totalorder %s1883_s30, %s1437_s12 }
 0x649   : > { %s997_s17 = scalar_lea.hbm %s2008_s14, %s1227_s23  ;;  %p1435_p6 = pneg %p1434_p3 }
 0x64a   : > { %p1440_p9 = scmp.lt.s32.totalorder %s1438_s28, %s1432_s0 }
 0x64c   : > { %p1441_p10 = por %p1440_p9, %p1439_p8 }
 0x64e   : > { %p1442_p11 = pnand %p1441_p10, %p1435_p6 }
 0x650   : > { %1445 = shalt.err (!%p1442_p11)
}
 0x651   : > { %s1446_s15 = scalar_lea.hbm %s997_s17, 64  ;;  %s1450_s1 = scalar_lea.hbm %s2008_s14, 512 }
 0x652   : > { %p1447_p0 = scmp.ne.s32.totalorder %s997_s17, %s1446_s15  ;;  %p1451_p2 = scmp.lt.u32.totalorder %s997_s17, %s2008_s14 }
 0x653   : > { %p1452_p5 = scmp.lt.u32.totalorder %s1450_s1, %s1446_s15  ;;  %p1454_p13 = scmp.lt.u32.totalorder %s1446_s15, %s997_s17 }
 0x654   : > { %p1448_p1 = pnand %p1447_p0, %p1725_p12 }
 0x655   : > { %p1453_p3 = por %p1452_p5, %p1451_p2 }
 0x656   : > { %p1449_p4 = pneg %p1448_p1 }
 0x657   : > { %p1455_p8 = por %p1454_p13, %p1453_p3 }
 0x659   : > { %p1456_p6 = pnand %p1455_p8, %p1449_p4 }
 0x65b   : > { %1459 = shalt.err (!%p1456_p6)
}
 0x65c   : > { %1291 = dma.vmem_to_hbm [thread:$0]  (%p1725_p12), %s1883_s30, 64, %s997_s17, %s971_s4  }
 0x65d PF: > { %s2010_s23 = sld [smem:[#allocation10_spill]]  ;;  %p1301_p9 = scmp.ge.s32.totalorder %s1554_s13, 2 }
 0x65f   : > { %p1295_p10 = pnand %p1301_p9, %p1713_p7 }
 0x663   : > { %s1011_s11 = sand.u32 1, %s2010_s23  }
 0x664   : > { %s1012_s26 = scalar_lea.sflag [#allocation4], %s1011_s11 }
 0x665   : > { %1505 = dma.done.wait (!%p1295_p10), %s1012_s26, 128  }
 0x666   : > { %1507 = vsyncadd (!%p1295_p10), %s1012_s26, 4294967168  ;;  %s2011_s24 = sld [smem:[#allocation19_spill]]  ;;  %s1020_s0 = sand.u32 1, %s1514_s21  }
 0x667   : > { %s1021_s27 = scalar_lea.sflag [#allocation6], %s1020_s0 }
 0x66c   : > { %p2012_p13 = scmp.ne.s32.totalorder %s2011_s24, 0 }
 0x66e   : > { %p1298_p11 = pnand %p1301_p9, %p2012_p13 }
 0x670   : > { %1509 = dma.done.wait (!%p1298_p11), %s1021_s27, 64  }
 0x671   : > { %1511 = vsyncadd (!%p1298_p11), %s1021_s27, 4294967232  ;;  %s29_s13 = sadd.s32 1, %s1554_s13   ;;  %s2013_s20 = sld [smem:[#allocation9_spill]] }
 0x672   : > { %p26_p12 = scmp.ge.s32.totalorder %s29_s13, 10   ;;  %s2014_s23 = sld [smem:[#allocation18_spill]] }
 0x673   : > { %s2015_s10 = sld [smem:[#allocation11_spill]]  ;;  %s2016_s26 = sld [smem:[#allocation17_spill]] }
 0x674   : > { %s2017_s27 = sld [smem:[#allocation12_spill]]  ;;  %s2018_s28 = sld [smem:[#allocation13_spill]] }
 0x675   : > { %s2019_s29 = sld [smem:[#allocation14_spill]]  ;;  %s2020_s30 = sld [smem:[#allocation16_spill]] }
 0x676   : > { %s2021_s21 = smov %s1518_s22  ;;  %s2023_s24 = smov %s1530_s25 }
 0x677   : > { %s2022_s22 = smov %s2013_s20  ;;  %28 = sbr.rel (!%p26_p12) target bundleno = 17 (0x11), region = 149 }
 0x679   : > { %s2024_s25 = smov %s2015_s10 }
 0x67e   :  { %1026 = vsyncpa [#allocation4], 1 }
 0x67f   :  { %1028 = vsyncpa [#allocation4 + $0x1], 1 }
 0x680   :  { %1029 = vsyncpa [#allocation6], 1 }
 0x681   :  { %1031 = vsyncpa [#allocation6 + $0x1], 1 }

</bundles_post_ra>
